<compile_context>
chip_gen: v6e
topology: v6e:2x2x1
jax: 0.10.0
libtpu: 0.0.40
codegen_flags: <defaults>
</compile_context>

<pallas_src>
import functools

import jax
import jax.numpy as jnp
from jax import lax
from jax.experimental import pallas as pl
from jax.experimental.pallas import tpu as pltpu


_TARGET_BLOCK_BYTES = 4 << 20   # ~4 MiB per operand block (x2 operands, x2 buffers ~16 MiB)
_MAX_HW_TILE = 8192             # lane-dim tile cap for the 3D path (multiple of 128)
_VMEM_LIMIT_BYTES = 32 << 20    # explicit scoped-VMEM limit, safe on v5e/v6e/v7x


def _sublane(dtype) -> int:
    # Sublane packing: 8 rows for 4-byte, 16 for 2-byte, 32 for 1-byte dtypes.
    return max(8, 32 // jnp.dtype(dtype).itemsize)


def _pad_axis_kernel(x_ref, o_ref, *, bound: int, tile: int,
                     block_axis: int, grid_axis: int):
    """Copy / zero / boundary handling along one padded axis.

    The output block at grid index j (grid axis `grid_axis`) covers
    [j*tile, (j+1)*tile) of the padded axis; entries < `bound` come from the
    input, the rest are zeros.  Pure-copy and pure-zero tiles use full-tile
    unmasked stores; only the single boundary tile uses a select mask.
    """
    j = pl.program_id(grid_axis)
    lo = j * tile
    hi = lo + tile

    @pl.when(hi <= bound)                 # tile entirely inside the input
    def _copy():
        o_ref[...] = x_ref[...]

    @pl.when(lo >= bound)                 # tile entirely inside the zero padding
    def _zero():
        o_ref[...] = jnp.zeros_like(o_ref)

    @pl.when(jnp.logical_and(lo < bound, bound < hi))   # boundary tile
    def _boundary():
        idx = lo + lax.broadcasted_iota(jnp.int32, o_ref.shape, block_axis)
        # Rows/lanes past `bound` in x_ref belong to a clipped trailing input
        # block and hold unspecified data -- they are masked out here.
        o_ref[...] = jnp.where(idx < bound, x_ref[...], jnp.zeros_like(o_ref))


def _tiny_kernel(x_ref, o_ref, *, flat_c_in: int):
    """Fallback for tensors whose per-batch flat size is below one lane tile."""
    o_ref[:, :flat_c_in] = x_ref[...]
    o_ref[:, flat_c_in:] = jnp.zeros(
        (o_ref.shape[0], o_ref.shape[1] - flat_c_in), o_ref.dtype)


@functools.partial(jax.jit, static_argnums=(1,))
def injective_pad_forward(x: jax.Array, pad_size: int) -> jax.Array:
    """Equivalent of injective_pad(pad_size).forward(x) for NCHW input."""
    assert pad_size >= 0
    n, c_in, h, w = x.shape
    c_out = c_in + pad_size
    hw = h * w
    itemsize = jnp.dtype(x.dtype).itemsize
    sub = _sublane(x.dtype)
    flat_c_in = c_in * hw
    flat_c_out = c_out * hw

    cost = pl.CostEstimate(
        flops=0, transcendentals=0,
        bytes_accessed=(flat_c_in + flat_c_out) * n * itemsize)

    if c_in >= sub and hw % 128 == 0:
        # ---- Tiled 3D path: (N, C, HW) view, sublane-aligned C tiles. -------
        x2 = x.reshape(n, c_in, hw)          # free: HW is contiguous per channel
        hw_tile = hw if hw <= _MAX_HW_TILE else _MAX_HW_TILE
        n_hw = pl.cdiv(hw, hw_tile)

        budget_c = max(sub, (_TARGET_BLOCK_BYTES // (hw_tile * itemsize)) // sub * sub)
        c_tile = min((c_in // sub) * sub, budget_c)
        n_c_in = pl.cdiv(c_in, c_tile)
        n_c_out = pl.cdiv(c_out, c_tile)

        block_bytes = c_tile * hw_tile * itemsize
        nb = int(min(n, max(1, _TARGET_BLOCK_BYTES // block_bytes)))
        if n >= 2:
            # Keep >= 2 steps on the leading parallel axis so v7x megacore
            # always gets two shards.
            nb = min(nb, max(1, n // 2))
        n_b = pl.cdiv(n, nb)

        # C_out is the INNERMOST grid axis; pure-pad tiles clamp to the last
        # valid input block, so their block index matches the previous step's
        # and the pipeline skips the input DMA entirely.
        grid = (n_b, n_hw, n_c_out)
        in_spec = pl.BlockSpec(
            (nb, c_tile, hw_tile),
            lambda b, k, j: (b, jnp.minimum(j, n_c_in - 1), k))
        out_spec = pl.BlockSpec((nb, c_tile, hw_tile), lambda b, k, j: (b, j, k))
        semantics = ("parallel", "parallel", "arbitrary")
        kernel = functools.partial(_pad_axis_kernel, bound=c_in, tile=c_tile,
                                   block_axis=1, grid_axis=2)
        out_shape2 = jax.ShapeDtypeStruct((n, c_out, hw), x.dtype)
        operand = x2

    elif flat_c_in >= 128:
        # ---- Flat 2D path: (N, C*HW) view, lane-dense 128-multiple tiles. ---
        # Handles small C (< one sublane tile) and H*W not a multiple of 128.
        xf = x.reshape(n, flat_c_in)
        rows_for_budget = min(n, 8)
        l_budget = max(128, (_TARGET_BLOCK_BYTES //
                             (rows_for_budget * itemsize)) // 128 * 128)
        l_tile = min((flat_c_in // 128) * 128, l_budget)
        n_j = pl.cdiv(flat_c_out, l_tile)
        n_in_j = pl.cdiv(flat_c_in, l_tile)

        if n <= 8:
            nb = n                     # full batch dim (second-minor = full extent)
        else:
            rows_budget = max(8, (_TARGET_BLOCK_BYTES // (l_tile * itemsize)) // 8 * 8)
            nb = min(max(8, (n // 2) // 8 * 8), rows_budget)   # mult of 8, >=2 shards
        n_b = pl.cdiv(n, nb)

        grid = (n_b, n_j)
        in_spec = pl.BlockSpec(
            (nb, l_tile), lambda b, j: (b, jnp.minimum(j, n_in_j - 1)))
        out_spec = pl.BlockSpec((nb, l_tile), lambda b, j: (b, j))
        semantics = ("parallel", "arbitrary")
        kernel = functools.partial(_pad_axis_kernel, bound=flat_c_in, tile=l_tile,
                                   block_axis=1, grid_axis=1)
        out_shape2 = jax.ShapeDtypeStruct((n, flat_c_out), x.dtype)
        operand = xf

    else:
        # ---- Tiny path: whole per-batch flat row fits below one lane tile. --
        xf = x.reshape(n, flat_c_in)
        grid = (1,)
        in_spec = pl.BlockSpec((n, flat_c_in), lambda i: (0, 0))
        out_spec = pl.BlockSpec((n, flat_c_out), lambda i: (0, 0))
        semantics = ("arbitrary",)
        kernel = functools.partial(_tiny_kernel, flat_c_in=flat_c_in)
        out_shape2 = jax.ShapeDtypeStruct((n, flat_c_out), x.dtype)
        operand = xf

    out2 = pl.pallas_call(
        kernel,
        out_shape=out_shape2,
        grid_spec=pltpu.PrefetchScalarGridSpec(
            num_scalar_prefetch=0,
            grid=grid,
            in_specs=[in_spec],
            out_specs=out_spec,
        ),
        compiler_params=pltpu.CompilerParams(
            dimension_semantics=semantics,
            vmem_limit_bytes=_VMEM_LIMIT_BYTES,
        ),
        cost_estimate=cost,
    )(operand)

    return out2.reshape(n, c_out, h, w)


def injective_pad_inverse(x: jax.Array, pad_size: int) -> jax.Array:
    """Equivalent of injective_pad(pad_size).inverse(x) (pure slicing glue)."""
    return x[:, : x.shape[1] - pad_size, :, :]


if __name__ == "__main__":
    key = jax.random.PRNGKey(0)
    k1, k2, k3, k4 = jax.random.split(key, 4)

    # Case 1: the module's canonical small NCHW shape (flat lane-dense path).
    pad1 = 3
    x1 = jax.random.normal(k1, (2, 4, 16, 16), dtype=jnp.float32)
    out1 = jax.block_until_ready(injective_pad_forward(x1, pad1))
    ref1 = jnp.pad(x1, ((0, 0), (0, pad1), (0, 0), (0, 0)))
    assert out1.shape == (2, 4 + pad1, 16, 16), out1.shape
    assert out1.dtype == x1.dtype
    assert jnp.array_equal(out1, ref1), "flat path mismatch"
    assert jnp.array_equal(injective_pad_inverse(out1, pad1), x1)

    # Case 2: tiled 3D path (copy / boundary / pure-pad channel tiles with
    # DMA-elided pad fetches and a clipped trailing channel block).
    pad2 = 8
    x2 = jax.random.normal(k2, (2, 12, 16, 16), dtype=jnp.float32)
    out2 = jax.block_until_ready(injective_pad_forward(x2, pad2))
    ref2 = jnp.pad(x2, ((0, 0), (0, pad2), (0, 0), (0, 0)))
    assert jnp.array_equal(out2, ref2), "tiled 3D path mismatch"
    assert jnp.array_equal(injective_pad_inverse(out2, pad2), x2)

    # Case 3: non-128-multiple H*W (7x7=49) exercises the flat path with a
    # lane-masked boundary tile.
    pad3 = 16
    x3 = jax.random.normal(k3, (2, 16, 7, 7), dtype=jnp.float32)
    out3 = jax.block_until_ready(injective_pad_forward(x3, pad3))
    ref3 = jnp.pad(x3, ((0, 0), (0, pad3), (0, 0), (0, 0)))
    assert jnp.array_equal(out3, ref3), "flat (odd HW) path mismatch"

    # Case 4: tiny per-batch flat size exercises the tiny fallback.
    pad4 = 2
    x4 = jax.random.normal(k4, (2, 3, 4, 4), dtype=jnp.float32)
    out4 = jax.block_until_ready(injective_pad_forward(x4, pad4))
    ref4 = jnp.pad(x4, ((0, 0), (0, pad4), (0, 0), (0, 0)))
    assert jnp.array_equal(out4, ref4), "tiny path mismatch"

    print("KERNEL_OK")
</pallas_src>

<mosaic_0001>
module attributes {stable_mosaic.version = 11 : i64} {
  func.func @_pad_axis_kernel(%arg0: i32, %arg1: i32, %arg2: memref<2x1024xf32, #tpu.memory_space<vmem>>, %arg3: memref<2x1024xf32, #tpu.memory_space<vmem>>) attributes {dimension_semantics = [#tpu.dimension_semantics<parallel>, #tpu.dimension_semantics<arbitrary>], iteration_bounds = array<i64: 1, 2>, scalar_prefetch = 0 : i64, scratch_operands = 0 : i64, tpu.core_type = #tpu.core_type<tc>, window_params = [{transform_indices = @transform_0, window_bounds = array<i64: 2, 1024>}, {transform_indices = @transform_1, window_bounds = array<i64: 2, 1024>}]} {
    %c1024_i32 = arith.constant 1024 : i32
    %0 = arith.muli %arg1, %c1024_i32 : i32
    %c1024_i32_0 = arith.constant 1024 : i32
    %1 = arith.addi %0, %c1024_i32_0 : i32
    %c1024_i32_1 = arith.constant 1024 : i32
    %2 = arith.cmpi sle, %1, %c1024_i32_1 : i32
    %3 = arith.extui %2 : i1 to i32
    %c0_i32 = arith.constant 0 : i32
    %4 = arith.cmpi ne, %3, %c0_i32 : i32
    scf.if %4 {
      %c0 = arith.constant 0 : index
      %c0_7 = arith.constant 0 : index
      %13 = vector.load %arg2[%c0, %c0_7] : memref<2x1024xf32, #tpu.memory_space<vmem>>, vector<2x1024xf32>
      %c0_8 = arith.constant 0 : index
      %c0_9 = arith.constant 0 : index
      %14 = vector.load %arg3[%c0_8, %c0_9] : memref<2x1024xf32, #tpu.memory_space<vmem>>, vector<2x1024xf32>
      tpu.vector_store %arg3[%c0_8, %c0_9], %13 {strides = array<i32>} : memref<2x1024xf32, #tpu.memory_space<vmem>>, vector<2x1024xf32>,
    } else {
    }
    %c1024_i32_2 = arith.constant 1024 : i32
    %5 = arith.cmpi sge, %0, %c1024_i32_2 : i32
    %6 = arith.extui %5 : i1 to i32
    %c0_i32_3 = arith.constant 0 : i32
    %7 = arith.cmpi ne, %6, %c0_i32_3 : i32
    scf.if %7 {
      %cst = arith.constant 0.000000e+00 : f32
      %13 = vector.broadcast %cst : f32 to vector<2x1024xf32>
      %c0 = arith.constant 0 : index
      %c0_7 = arith.constant 0 : index
      %14 = vector.load %arg3[%c0, %c0_7] : memref<2x1024xf32, #tpu.memory_space<vmem>>, vector<2x1024xf32>
      tpu.vector_store %arg3[%c0, %c0_7], %13 {strides = array<i32>} : memref<2x1024xf32, #tpu.memory_space<vmem>>, vector<2x1024xf32>,
    } else {
    }
    %c1024_i32_4 = arith.constant 1024 : i32
    %8 = arith.cmpi slt, %0, %c1024_i32_4 : i32
    %c1024_i32_5 = arith.constant 1024 : i32
    %9 = arith.cmpi sgt, %1, %c1024_i32_5 : i32
    %10 = arith.andi %8, %9 : i1
    %11 = arith.extui %10 : i1 to i32
    %c0_i32_6 = arith.constant 0 : i32
    %12 = arith.cmpi ne, %11, %c0_i32_6 : i32
    scf.if %12 {
      %13 = tpu.iota {dimensions = array<i32: 1>} : vector<2x1024xi32>
      %14 = vector.broadcast %0 : i32 to vector<2x1024xi32>
      %15 = arith.addi %14, %13 : vector<2x1024xi32>
      %c1024_i32_7 = arith.constant 1024 : i32
      %16 = vector.broadcast %c1024_i32_7 : i32 to vector<2x1024xi32>
      %17 = arith.cmpi slt, %15, %16 : vector<2x1024xi32>
      %c0 = arith.constant 0 : index
      %c0_8 = arith.constant 0 : index
      %18 = vector.load %arg2[%c0, %c0_8] : memref<2x1024xf32, #tpu.memory_space<vmem>>, vector<2x1024xf32>
      %cst = arith.constant 0.000000e+00 : f32
      %19 = vector.broadcast %cst : f32 to vector<2x1024xf32>
      %20 = arith.select %17, %18, %19 : vector<2x1024xi1>, vector<2x1024xf32>
      %c0_9 = arith.constant 0 : index
      %c0_10 = arith.constant 0 : index
      %21 = vector.load %arg3[%c0_9, %c0_10] : memref<2x1024xf32, #tpu.memory_space<vmem>>, vector<2x1024xf32>
      tpu.vector_store %arg3[%c0_9, %c0_10], %20 {strides = array<i32>} : memref<2x1024xf32, #tpu.memory_space<vmem>>, vector<2x1024xf32>,
    } else {
    }
    return
  }
  func.func @transform_0(%arg0: i32, %arg1: i32) -> (i32, i32) {
    %c0_i32 = arith.constant 0 : i32
    %0 = arith.minsi %arg1, %c0_i32 : i32
    %c0_i32_0 = arith.constant 0 : i32
    return %arg0, %0 : i32, i32
  }
  func.func @transform_1(%arg0: i32, %arg1: i32) -> (i32, i32) {
    %c0_i32 = arith.constant 0 : i32
    return %arg0, %arg1 : i32, i32
  }
}

</mosaic_0001>

<bundles_post_ra>
// kernel: injective_pad_forward.1
= control target key start
LH: loop header
LB: loop body
LE: loop exit
PB: predicated region body
PF: predicated region fallthrough
CT: control target
= control target key end

     0   :  { %s1281_s6 = smov 0   ;;  %s1283_s7 = smov 0   ;;  %s1770_s0 = inlined_call_operand.vmem [shape: f32[2,1024], index: 0, kind: input, shape index: {}]   ;;  %s1771_s1 = inlined_call_operand.vmem [shape: f32[2,1792], index: 1, kind: output, shape index: {}]  }
   0x1   :  { %s1285_s8 = smov 0   ;;  %s1287_s9 = smov 0  }
   0x2   :  { %s1289_s10 = smov 0  }
   0x3 LB: > { %s878_s11 = sadd.s32 4294967295, %s1201_s10   ;;  %s20_s12 = sadd.s32 1, %s1197_s9  ;;  %s1201_s10 = sphi %s1289_s10, %s11_s10   ;;  %s1197_s9 = sphi %s1287_s9, %s1787_s9   ;;  %s1193_s8 = sphi %s1285_s8, %s1786_s8   ;;  %s1189_s7 = sphi %s1283_s7, %s1785_s7   ;;  %s1185_s6 = sphi %s1281_s6, %s1784_s6  }
   0x4   : > { %p21_p0 = scmp.ge.s32.totalorder %s20_s12, 2  ;;  %s64_s13 = sadd.s32 1, %s1189_s7 }
   0x5   : > { %p74_p1 = scmp.ne.s32.totalorder %s1189_s7, %s1185_s6  ;;  %p75_p2 = scmp.eq.s32.totalorder %s878_s11, 1 }
   0x6   : > { %s1789_s12 = smov (%p21_p0, %s20_s12), 0  ;;  %p882_p4 = scmp.ge.s32.totalorder %s1201_s10, 1 }
   0x7   : > { %p1310_p3 = por %p75_p2, %p74_p1  ;;  %s60_s15 = ssub.s32 %s1197_s9, %s1789_s12 }
   0x8   : > { %p116_p5 = scmp.lt.s32.totalorder %s1201_s10, 3  ;;  %p62_p6 = scmp.eq.s32.totalorder %s60_s15, 0 }
   0xa   : > { %p117_p7 = pnand %p882_p4, %p116_p5 }
   0xb   : > { %s1319_s16 = scalar_select %p62_p6, %s1189_s7, %s64_s13  }
   0xc   : > { %120 = sbr.rel (%p117_p7) target bundleno = 217 (0xd9), region = 24  ;;  %s138_s17 = sand.u32 (!%p117_p7), 1, %s1185_s6  }
   0xd   : > { %p141_p8 = scmp.lt.s32.totalorder (!%p117_p7), %s1193_s8, 0  ;;  %s883_s18 = sshll.u32 (!%p117_p7), %s138_s17, 4 }
   0xe   : > { %s886_s19 = sshll.u32 (!%p117_p7), %s1193_s8, 10  ;;  %s1327_s27 = scalar_lea.vmem (!%p117_p7), [#allocation2], %s883_s18  }
   0xf   : > { %s161_s20 = sadd.s32 (!%p117_p7), 1024, %s886_s19 }
  0x10   : > { %p1329_p10 = scmp.gt.s32.totalorder (!%p117_p7), %s161_s20, 1024 }
  0x11   : > { %s142_s21 = scalar_select %p141_p8, %s1193_s8, 0 }
  0x13   : > { %s884_s22 = sshll.u32 %s142_s21, 3 }
  0x14   : > { %p146_p9 = scmp.lt.s32.totalorder %s884_s22, 7  ;;  %165 = sbr.rel (%p1329_p10) target bundleno = 27 (0x1b), region = 28 }
  0x16   : > { %s1791_s22 = smov (!%p146_p9, %s884_s22), 7 }
  0x17   : > { %s885_s23 = sshll.u32 %s1791_s22, 1 }
  0x18   : > { %s151_s26 = scalar_lea.vmem %s1770_s0, %s885_s23 }
  0x19   : > { %v166_v0 = vld [vmem:[%s151_s26] sm:$0xff]  ;;  %v167_v1 = vld [vmem:[%s151_s26 + $0x8] sm:$0xff] }
  0x1a   : > { %168 = vst [vmem:[%s1327_s27] sm:$0xff] %v166_v0  ;;  %169 = vst [vmem:[%s1327_s27 + $0x8] sm:$0xff] %v167_v1 }
  0x1b PF: > { %p888_p11 = scmp.lt.s32.totalorder %s886_s19, 1024 }
  0x1d   : > { %173 = sbr.rel (%p888_p11) target bundleno = 36 (0x24), region = 32 }
  0x22   : > { %v1267_v2 = vmov 0.0  }
  0x23   : > { %174 = vst [vmem:[%s1327_s27] sm:$0xff] %v1267_v2  ;;  %175 = vst [vmem:[%s1327_s27 + $0x8] sm:$0xff] %v1267_v2 }
  0x24 PF: > { %p178_p12 = pnand %p888_p11, %p1329_p10 }
  0x26   : > { %181 = sbr.rel (%p178_p12) target bundleno = 66 (0x42), region = 36 }
  0x2b   : > { %v182_v3 = vlaneseq  ;;  %v208_v4 = vld [vmem:[%s151_s26] sm:$0xff]  ;;  %v209_v5 = vld [vmem:[%s151_s26 + $0x8] sm:$0xff]  ;;  %v191_v6 = vstv %s886_s19  ;;  %v1268_v7 = vmov 1983009808  }
  0x2c   : > { %v214_v8 = vunpack.c.l.s4 %v1268_v7  ;;  %v212_v11 = vcombine.high %v208_v4, %v208_v4  ;;  %v229_v13 = vcombine.high %v209_v5, %v209_v5 }
  0x2d   : > { %v183_v9 = vand.u32 127, %v182_v3  ;;  %v217_v10 = vshrl.u32 %v182_v3, 7 }
  0x2e   : > { %v215_v12 = vunpack.c.0.s8 %v214_v8 }
  0x2f   : > { %v184_v14 = vadd.s32 128, %v183_v9  ;;  %v185_v15 = vadd.s32 256, %v183_v9  ;;  %v186_v16 = vadd.s32 384, %v183_v9  ;;  %v192_v17 = vadd.s32 %v191_v6, %v183_v9 }
  0x30   : > { %v218_v18 = vsub.s32 %v215_v12, %v217_v10  ;;  %v187_v19 = vadd.s32 512, %v183_v9  ;;  %v188_v20 = vadd.s32 640, %v183_v9  ;;  %v189_v21 = vadd.s32 768, %v183_v9 }
  0x31   : > { %v193_v22 = vadd.s32 %v191_v6, %v184_v14  ;;  %v194_v23 = vadd.s32 %v191_v6, %v185_v15  ;;  %v195_v24 = vadd.s32 %v191_v6, %v186_v16  ;;  %vm200_vm0 = vcmp.lt.s32.totalorder %v192_v17, 1024 }
  0x32   : > { %v219_v25 = vrot.slane %v208_v4, %v218_v18  ;;  %v226_v26 = vrot.slane %v212_v11, %v218_v18  ;;  %v190_v27 = vadd.s32 896, %v183_v9  ;;  %v196_v28 = vadd.s32 %v191_v6, %v187_v19 }
  0x33   : > { %vm201_vm1 = vcmp.lt.s32.totalorder %v193_v22, 1024  ;;  %vm202_vm2 = vcmp.lt.s32.totalorder %v194_v23, 1024  ;;  %vm203_vm3 = vcmp.lt.s32.totalorder %v195_v24, 1024  ;;  %v197_v29 = vadd.s32 %v191_v6, %v188_v20 }
  0x34   : > { %v227_v30 = vcombine.high %v219_v25, %v219_v25  ;;  %v228_v31 = vcombine.high %v226_v26, %v226_v26  ;;  %v254_v32 = vsel %vm200_vm0, %v219_v25, 0.0  ;;  %v256_v33 = vsel %vm202_vm2, %v226_v26, 0.0 }
  0x35   : > { %v198_v34 = vadd.s32 %v191_v6, %v189_v21  ;;  %v199_v35 = vadd.s32 %v191_v6, %v190_v27  ;;  %vm204_vm4 = vcmp.lt.s32.totalorder %v196_v28, 1024  ;;  %vm205_vm5 = vcmp.lt.s32.totalorder %v197_v29, 1024 }
  0x36   : > { %v255_v36 = vsel %vm201_vm1, %v227_v30, 0.0  ;;  %v257_v37 = vsel %vm203_vm3, %v228_v31, 0.0  ;;  %v236_v38 = vrot.slane %v209_v5, %v218_v18  ;;  %v243_v39 = vrot.slane %v229_v13, %v218_v18 }
  0x37   : > { %v270_v40 = vcombine.low %v254_v32, %v255_v36  ;;  %v271_v41 = vcombine.low %v256_v33, %v257_v37  ;;  %vm206_vm6 = vcmp.lt.s32.totalorder %v198_v34, 1024  ;;  %vm207_vm7 = vcmp.lt.s32.totalorder %v199_v35, 1024 }
  0x38   : > { %v244_v42 = vcombine.high %v236_v38, %v236_v38  ;;  %v245_v43 = vcombine.high %v243_v39, %v243_v39  ;;  %v258_v44 = vsel %vm204_vm4, %v236_v38, 0.0  ;;  %v260_v45 = vsel %vm206_vm6, %v243_v39, 0.0 }
  0x39   : > { %v278_v46 = vrot.slane %v270_v40, %v218_v18  ;;  %v285_v47 = vrot.slane %v271_v41, %v218_v18 }
  0x3a   : > { %v259_v48 = vsel %vm205_vm5, %v244_v42, 0.0  ;;  %v261_v49 = vsel %vm207_vm7, %v245_v43, 0.0 }
  0x3b   : > { %v286_v50 = vcombine.low %v278_v46, %v285_v47  ;;  %v287_v51 = vcombine.low %v258_v44, %v259_v48  ;;  %v288_v52 = vcombine.low %v260_v45, %v261_v49 }
  0x3d   : > { %306 = vst [vmem:[%s1327_s27] sm:$0xff] %v286_v50  ;;  %v295_v53 = vrot.slane %v287_v51, %v218_v18  ;;  %v302_v54 = vrot.slane %v288_v52, %v218_v18 }
  0x3f   : > { %v303_v55 = vcombine.low %v295_v53, %v302_v54 }
  0x41   : > { %307 = vst [vmem:[%s1327_s27 + $0x8] sm:$0xff] %v303_v55 }
  0x42 PF: > { %314 = sbr.rel (!%p1310_p3) target bundleno = 217 (0xd9), region = 40  ;;  %s890_s29 = sshll.u32 (%p1310_p3), %s1193_s8, 3 }
  0x43   : > { %s920_s30 = sshll.u32 (%p1310_p3), %s1193_s8, 4  ;;  %s316_s2 = ssub.s32 (%p1310_p3), 14, %s890_s29 }
  0x44   : > { %s1350_s5 = scalar_lea.vmem (%p1310_p3), %s1771_s1, %s920_s30   ;;  %p317_p13 = scmp.lt.s32.totalorder (%p1310_p3), %s316_s2, 8 }
  0x47   : > { %s1793_s2 = smov (!%p317_p13, %s316_s2), 8 }
  0x48   : > { %s891_s6 = sshll.u32 %s1793_s2, 5  ;;  %s1352_s11 = sshll.u32 %s1793_s2, 1 }
  0x49   : > { %p895_p0 = scmp.eq.s32.totalorder %s891_s6, 0 }
  0x4a   : > { %p329_p1 = scmp.lt.u32.totalorder (!%p895_p0), %s1352_s11, 8 }
  0x4b   : > { %328 = sbr.rel (%p895_p0) target bundleno = 217 (0xd9), region = 44 }
  0x50   : > { %332 = sbr.rel (%p329_p1) target bundleno = 208 (0xd0), region = 48  ;;  %s1356_s13 = sand.u32 (!%p329_p1), 7, %s1352_s11  }
  0x51   : > { %p349_p2 = scmp.eq.s32.totalorder (!%p329_p1), %s1356_s13, 0  ;;  %p896_p3 = scmp.ne.s32.totalorder (!%p329_p1), %s1356_s13, 0 }
  0x55   : > { %352 = sbr.rel (%p896_p3) target bundleno = 144 (0x90), region = 63  ;;  %s353_s8 = sshrl.u32 (!%p896_p3), %s1352_s11, 3 }
  0x56   : > { %s1363_s14 = sshrl.u32 (!%p896_p3), %s353_s8, 6 }
  0x57   : > { %p897_p4 = scmp.le.s32.totalorder (!%p896_p3), %s1363_s14, 0 }
  0x5a   : > { %798 = sbr.rel (%p897_p4) target bundleno = 128 (0x80), region = 144  ;;  %s1774_s15 = smov (!%p897_p4), %s1350_s5 }
  0x5b   : > { %s1775_s17 = smov (!%p897_p4), %s1327_s27  ;;  %s1372_s18 = smov (!%p897_p4), 0  }
  0x5c   : > { %s1374_s19 = smov (!%p897_p4), 0  }
  0x5f LB: >> { %v366_v56 = vld [vmem:[%s1209_s17] sm:$0xff]  ;;  %v368_v57 = vld [vmem:[%s1209_s17 + $0x8] sm:$0xff]  ;;  %v370_v58 = vld [vmem:[%s1209_s17 + $0x10] sm:$0xff]  ;;  %s494_s20 = sadd.s32 1, %s1213_s18  ;;  %s360_s19 = sadd.s32 1, %s1217_s19   ;;  %s1217_s19 = sphi %s1374_s19, %s360_s19   ;;  %s1213_s18 = sphi %s1372_s18, %s1778_s18   ;;  %s1209_s17 = sphi %s1775_s17, %s1777_s17   ;;  %s1205_s15 = sphi %s1774_s15, %s1776_s15  }
  0x60   : >> { %367 = vst [vmem:[%s1205_s15] sm:$0xff] %v366_v56  ;;  %369 = vst [vmem:[%s1205_s15 + $0x8] sm:$0xff] %v368_v57  ;;  %v372_v59 = vld [vmem:[%s1209_s17 + $0x18] sm:$0xff]  ;;  %v374_v60 = vld [vmem:[%s1209_s17 + $0x20] sm:$0xff]  ;;  %p495_p5 = scmp.ge.s32.totalorder %s494_s20, %s1363_s14  ;;  %p359_p6 = scmp.ge.s32.totalorder %s360_s19, %s1363_s14 }
  0x61   : >> { %371 = vst [vmem:[%s1205_s15 + $0x10] sm:$0xff] %v370_v58  ;;  %v376_v61 = vld [vmem:[%s1209_s17 + $0x28] sm:$0xff]  ;;  %373 = vst [vmem:[%s1205_s15 + $0x18] sm:$0xff] %v372_v59  ;;  %v378_v62 = vld [vmem:[%s1209_s17 + $0x30] sm:$0xff] }
  0x62   : >> { %375 = vst [vmem:[%s1205_s15 + $0x20] sm:$0xff] %v374_v60  ;;  %377 = vst [vmem:[%s1205_s15 + $0x28] sm:$0xff] %v376_v61  ;;  %v380_v63 = vld [vmem:[%s1209_s17 + $0x38] sm:$0xff]  ;;  %v382_v0 = vld [vmem:[%s1209_s17 + $0x40] sm:$0xff]  ;;  %s1795_s20 = smov (%p495_p5, %s494_s20), 0 }
  0x63   : >> { %379 = vst [vmem:[%s1205_s15 + $0x30] sm:$0xff] %v378_v62  ;;  %381 = vst [vmem:[%s1205_s15 + $0x38] sm:$0xff] %v380_v63  ;;  %v384_v1 = vld [vmem:[%s1209_s17 + $0x48] sm:$0xff]  ;;  %v386_v2 = vld [vmem:[%s1209_s17 + $0x50] sm:$0xff]  ;;  %s898_s21 = sshll.u32 %s1795_s20, 9  ;;  %s1778_s18 = smov %s1795_s20 }
  0x64   : >> { %383 = vst [vmem:[%s1205_s15 + $0x40] sm:$0xff] %v382_v0  ;;  %v388_v3 = vld [vmem:[%s1209_s17 + $0x58] sm:$0xff]  ;;  %385 = vst [vmem:[%s1205_s15 + $0x48] sm:$0xff] %v384_v1  ;;  %v390_v4 = vld [vmem:[%s1209_s17 + $0x60] sm:$0xff]  ;;  %s1430_s22 = scalar_lea.vmem %s1327_s27, %s898_s21 [#allocation2]   ;;  %s1433_s23 = scalar_lea.vmem %s1350_s5, %s898_s21  }
  0x65   : >> { %387 = vst [vmem:[%s1205_s15 + $0x50] sm:$0xff] %v386_v2  ;;  %389 = vst [vmem:[%s1205_s15 + $0x58] sm:$0xff] %v388_v3  ;;  %v392_v5 = vld [vmem:[%s1209_s17 + $0x68] sm:$0xff]  ;;  %v394_v6 = vld [vmem:[%s1209_s17 + $0x70] sm:$0xff] }
  0x66   : >> { %391 = vst [vmem:[%s1205_s15 + $0x60] sm:$0xff] %v390_v4  ;;  %393 = vst [vmem:[%s1205_s15 + $0x68] sm:$0xff] %v392_v5  ;;  %v396_v7 = vld [vmem:[%s1209_s17 + $0x78] sm:$0xff]  ;;  %v398_v8 = vld [vmem:[%s1209_s17 + $0x80] sm:$0xff] }
  0x67   : >> { %395 = vst [vmem:[%s1205_s15 + $0x70] sm:$0xff] %v394_v6  ;;  %v400_v9 = vld [vmem:[%s1209_s17 + $0x88] sm:$0xff]  ;;  %397 = vst [vmem:[%s1205_s15 + $0x78] sm:$0xff] %v396_v7  ;;  %v402_v10 = vld [vmem:[%s1209_s17 + $0x90] sm:$0xff] }
  0x68   : >> { %399 = vst [vmem:[%s1205_s15 + $0x80] sm:$0xff] %v398_v8  ;;  %401 = vst [vmem:[%s1205_s15 + $0x88] sm:$0xff] %v400_v9  ;;  %v404_v11 = vld [vmem:[%s1209_s17 + $0x98] sm:$0xff]  ;;  %v406_v12 = vld [vmem:[%s1209_s17 + $0xa0] sm:$0xff] }
  0x69   : >> { %403 = vst [vmem:[%s1205_s15 + $0x90] sm:$0xff] %v402_v10  ;;  %405 = vst [vmem:[%s1205_s15 + $0x98] sm:$0xff] %v404_v11  ;;  %v408_v13 = vld [vmem:[%s1209_s17 + $0xa8] sm:$0xff]  ;;  %v410_v14 = vld [vmem:[%s1209_s17 + $0xb0] sm:$0xff] }
  0x6a   : >> { %407 = vst [vmem:[%s1205_s15 + $0xa0] sm:$0xff] %v406_v12  ;;  %v412_v15 = vld [vmem:[%s1209_s17 + $0xb8] sm:$0xff]  ;;  %409 = vst [vmem:[%s1205_s15 + $0xa8] sm:$0xff] %v408_v13  ;;  %v414_v16 = vld [vmem:[%s1209_s17 + $0xc0] sm:$0xff] }
  0x6b   : >> { %411 = vst [vmem:[%s1205_s15 + $0xb0] sm:$0xff] %v410_v14  ;;  %413 = vst [vmem:[%s1205_s15 + $0xb8] sm:$0xff] %v412_v15  ;;  %v416_v17 = vld [vmem:[%s1209_s17 + $0xc8] sm:$0xff]  ;;  %v418_v18 = vld [vmem:[%s1209_s17 + $0xd0] sm:$0xff] }
  0x6c   : >> { %415 = vst [vmem:[%s1205_s15 + $0xc0] sm:$0xff] %v414_v16  ;;  %417 = vst [vmem:[%s1205_s15 + $0xc8] sm:$0xff] %v416_v17  ;;  %v420_v19 = vld [vmem:[%s1209_s17 + $0xd8] sm:$0xff]  ;;  %v422_v20 = vld [vmem:[%s1209_s17 + $0xe0] sm:$0xff] }
  0x6d   : >> { %419 = vst [vmem:[%s1205_s15 + $0xd0] sm:$0xff] %v418_v18  ;;  %v424_v21 = vld [vmem:[%s1209_s17 + $0xe8] sm:$0xff]  ;;  %421 = vst [vmem:[%s1205_s15 + $0xd8] sm:$0xff] %v420_v19  ;;  %v426_v22 = vld [vmem:[%s1209_s17 + $0xf0] sm:$0xff] }
  0x6e   : >> { %423 = vst [vmem:[%s1205_s15 + $0xe0] sm:$0xff] %v422_v20  ;;  %425 = vst [vmem:[%s1205_s15 + $0xe8] sm:$0xff] %v424_v21  ;;  %v428_v23 = vld [vmem:[%s1209_s17 + $0xf8] sm:$0xff]  ;;  %v430_v24 = vld [vmem:[%s1209_s17 + $0x100] sm:$0xff] }
  0x6f   : >> { %427 = vst [vmem:[%s1205_s15 + $0xf0] sm:$0xff] %v426_v22  ;;  %429 = vst [vmem:[%s1205_s15 + $0xf8] sm:$0xff] %v428_v23  ;;  %v432_v25 = vld [vmem:[%s1209_s17 + $0x108] sm:$0xff]  ;;  %v434_v26 = vld [vmem:[%s1209_s17 + $0x110] sm:$0xff] }
  0x70   : >> { %431 = vst [vmem:[%s1205_s15 + $0x100] sm:$0xff] %v430_v24  ;;  %v436_v27 = vld [vmem:[%s1209_s17 + $0x118] sm:$0xff]  ;;  %433 = vst [vmem:[%s1205_s15 + $0x108] sm:$0xff] %v432_v25  ;;  %v438_v28 = vld [vmem:[%s1209_s17 + $0x120] sm:$0xff] }
  0x71   : >> { %435 = vst [vmem:[%s1205_s15 + $0x110] sm:$0xff] %v434_v26  ;;  %437 = vst [vmem:[%s1205_s15 + $0x118] sm:$0xff] %v436_v27  ;;  %v440_v29 = vld [vmem:[%s1209_s17 + $0x128] sm:$0xff]  ;;  %v442_v30 = vld [vmem:[%s1209_s17 + $0x130] sm:$0xff] }
  0x72   : >> { %439 = vst [vmem:[%s1205_s15 + $0x120] sm:$0xff] %v438_v28  ;;  %441 = vst [vmem:[%s1205_s15 + $0x128] sm:$0xff] %v440_v29  ;;  %v444_v31 = vld [vmem:[%s1209_s17 + $0x138] sm:$0xff]  ;;  %v446_v32 = vld [vmem:[%s1209_s17 + $0x140] sm:$0xff] }
  0x73   : >> { %443 = vst [vmem:[%s1205_s15 + $0x130] sm:$0xff] %v442_v30  ;;  %v448_v33 = vld [vmem:[%s1209_s17 + $0x148] sm:$0xff]  ;;  %445 = vst [vmem:[%s1205_s15 + $0x138] sm:$0xff] %v444_v31  ;;  %v450_v34 = vld [vmem:[%s1209_s17 + $0x150] sm:$0xff] }
  0x74   : >> { %447 = vst [vmem:[%s1205_s15 + $0x140] sm:$0xff] %v446_v32  ;;  %449 = vst [vmem:[%s1205_s15 + $0x148] sm:$0xff] %v448_v33  ;;  %v452_v35 = vld [vmem:[%s1209_s17 + $0x158] sm:$0xff]  ;;  %v454_v36 = vld [vmem:[%s1209_s17 + $0x160] sm:$0xff] }
  0x75   : >> { %451 = vst [vmem:[%s1205_s15 + $0x150] sm:$0xff] %v450_v34  ;;  %453 = vst [vmem:[%s1205_s15 + $0x158] sm:$0xff] %v452_v35  ;;  %v456_v37 = vld [vmem:[%s1209_s17 + $0x168] sm:$0xff]  ;;  %v458_v38 = vld [vmem:[%s1209_s17 + $0x170] sm:$0xff] }
  0x76   : >> { %455 = vst [vmem:[%s1205_s15 + $0x160] sm:$0xff] %v454_v36  ;;  %v460_v39 = vld [vmem:[%s1209_s17 + $0x178] sm:$0xff]  ;;  %457 = vst [vmem:[%s1205_s15 + $0x168] sm:$0xff] %v456_v37  ;;  %v462_v40 = vld [vmem:[%s1209_s17 + $0x180] sm:$0xff] }
  0x77   : >> { %459 = vst [vmem:[%s1205_s15 + $0x170] sm:$0xff] %v458_v38  ;;  %461 = vst [vmem:[%s1205_s15 + $0x178] sm:$0xff] %v460_v39  ;;  %v464_v41 = vld [vmem:[%s1209_s17 + $0x188] sm:$0xff]  ;;  %v466_v42 = vld [vmem:[%s1209_s17 + $0x190] sm:$0xff] }
  0x78   : >> { %463 = vst [vmem:[%s1205_s15 + $0x180] sm:$0xff] %v462_v40  ;;  %465 = vst [vmem:[%s1205_s15 + $0x188] sm:$0xff] %v464_v41  ;;  %v468_v43 = vld [vmem:[%s1209_s17 + $0x198] sm:$0xff]  ;;  %v470_v44 = vld [vmem:[%s1209_s17 + $0x1a0] sm:$0xff] }
  0x79   : >> { %467 = vst [vmem:[%s1205_s15 + $0x190] sm:$0xff] %v466_v42  ;;  %v472_v45 = vld [vmem:[%s1209_s17 + $0x1a8] sm:$0xff]  ;;  %469 = vst [vmem:[%s1205_s15 + $0x198] sm:$0xff] %v468_v43  ;;  %v474_v46 = vld [vmem:[%s1209_s17 + $0x1b0] sm:$0xff] }
  0x7a   : >> { %471 = vst [vmem:[%s1205_s15 + $0x1a0] sm:$0xff] %v470_v44  ;;  %473 = vst [vmem:[%s1205_s15 + $0x1a8] sm:$0xff] %v472_v45  ;;  %v476_v47 = vld [vmem:[%s1209_s17 + $0x1b8] sm:$0xff]  ;;  %v478_v48 = vld [vmem:[%s1209_s17 + $0x1c0] sm:$0xff] }
  0x7b   : >> { %475 = vst [vmem:[%s1205_s15 + $0x1b0] sm:$0xff] %v474_v46  ;;  %477 = vst [vmem:[%s1205_s15 + $0x1b8] sm:$0xff] %v476_v47  ;;  %v480_v49 = vld [vmem:[%s1209_s17 + $0x1c8] sm:$0xff]  ;;  %v482_v50 = vld [vmem:[%s1209_s17 + $0x1d0] sm:$0xff]  ;;  %362 = sbr.rel (!%p359_p6) target bundleno = 95 (0x5f), region = 150 }
  0x7c   : >> { %479 = vst [vmem:[%s1205_s15 + $0x1c0] sm:$0xff] %v478_v48  ;;  %v484_v51 = vld [vmem:[%s1209_s17 + $0x1d8] sm:$0xff]  ;;  %481 = vst [vmem:[%s1205_s15 + $0x1c8] sm:$0xff] %v480_v49  ;;  %v486_v52 = vld [vmem:[%s1209_s17 + $0x1e0] sm:$0xff] }
  0x7d   : >> { %483 = vst [vmem:[%s1205_s15 + $0x1d0] sm:$0xff] %v482_v50  ;;  %485 = vst [vmem:[%s1205_s15 + $0x1d8] sm:$0xff] %v484_v51  ;;  %v488_v53 = vld [vmem:[%s1209_s17 + $0x1e8] sm:$0xff]  ;;  %v490_v54 = vld [vmem:[%s1209_s17 + $0x1f0] sm:$0xff] }
  0x7e   : >> { %487 = vst [vmem:[%s1205_s15 + $0x1e0] sm:$0xff] %v486_v52  ;;  %489 = vst [vmem:[%s1205_s15 + $0x1e8] sm:$0xff] %v488_v53  ;;  %v492_v55 = vld [vmem:[%s1209_s17 + $0x1f8] sm:$0xff]  ;;  %s1777_s17 = smov %s1430_s22 }
  0x7f   : >> { %491 = vst [vmem:[%s1205_s15 + $0x1f0] sm:$0xff] %v490_v54  ;;  %493 = vst [vmem:[%s1205_s15 + $0x1f8] sm:$0xff] %v492_v55  ;;  %s1776_s15 = smov %s1433_s23 }
  0x80 PF: > { %s1539_s24 = sand.u32 63, %s353_s8   ;;  %s921_s25 = sshll.u32 %s1363_s14, 13 }
  0x81   : > { %s505_s26 = sshra.s32 %s921_s25, 4  ;;  %p903_p7 = scmp.le.s32.totalorder %s1539_s24, 0 }
  0x82   : > { %s506_s28 = scalar_lea.vmem %s1327_s27, %s505_s26 [#allocation2]   ;;  %s509_s29 = scalar_lea.vmem %s1350_s5, %s505_s26  }
  0x83   : > { %812 = sbr.rel (%p903_p7) target bundleno = 144 (0x90), region = 155  ;;  %s1219_s30 = smov (!%p903_p7), %s509_s29  }
  0x84   : > { %s1223_s2 = smov (!%p903_p7), %s506_s28   ;;  %s1227_s3 = smov (!%p903_p7), 0  }
  0x85   : > { %s1231_s4 = smov (!%p903_p7), 0  }
  0x88 LB: >> { %v521_v56 = vld [vmem:[%s1225_s2] sm:$0xff]  ;;  %s523_s6 = sadd.s32 1, %s1229_s3  ;;  %s515_s4 = sadd.s32 1, %s1233_s4   ;;  %s1233_s4 = sphi %s1231_s4, %s515_s4   ;;  %s1229_s3 = sphi %s1227_s3, %s1228_s3   ;;  %s1225_s2 = sphi %s1223_s2, %s528_s2   ;;  %s1221_s30 = sphi %s1219_s30, %s529_s30  }
  0x89   : >> { %522 = vst [vmem:[%s1221_s30] sm:$0xff] %v521_v56  ;;  %p524_p8 = scmp.ge.s32.totalorder %s523_s6, %s1539_s24  ;;  %p514_p9 = scmp.ge.s32.totalorder %s515_s4, %s1539_s24 }
  0x8b   : >> { %s1797_s6 = smov (%p524_p8, %s523_s6), 0  ;;  %517 = sbr.rel (!%p514_p9) target bundleno = 136 (0x88), region = 161 }
  0x8c   : >> { %s904_s8 = sshll.u32 %s1797_s6, 3  ;;  %s1228_s3 = smov %s1797_s6  }
  0x8d   : >> { %s528_s2 = scalar_lea.vmem %s506_s28, %s904_s8 [#allocation2]   ;;  %s529_s30 = scalar_lea.vmem %s509_s29, %s904_s8  }
  0x90 PF: > { %532 = sbr.rel (%p349_p2) target bundleno = 208 (0xd0), region = 81  ;;  %s1551_s14 = ssub.s32 (!%p349_p2), %s1352_s11, %s1356_s13 }
  0x91   : > { %s538_s15 = sshrl.u32 (!%p349_p2), %s1352_s11, 3  ;;  %s535_s17 = scalar_lea.vmem (!%p349_p2), %s1327_s27, %s1551_s14 [#allocation2] }
  0x92   : > { %s537_s18 = scalar_lea.vmem (!%p349_p2), %s1350_s5, %s1551_s14  ;;  %s1560_s19 = sshrl.u32 (!%p349_p2), %s538_s15, 6 }
  0x93   : > { %p906_p10 = scmp.le.s32.totalorder (!%p349_p2), %s1560_s19, 0 }
  0x95   : > { %826 = sbr.rel (%p906_p10) target bundleno = 187 (0xbb), region = 166  ;;  %s1779_s20 = smov (!%p906_p10), %s1350_s5 }
  0x96   : > { %s1780_s21 = smov (!%p906_p10), %s1327_s27  ;;  %s1569_s22 = smov (!%p906_p10), 0  }
  0x97   : > { %s1571_s23 = smov (!%p906_p10), 0  }
  0x9a LB: >> { %v551_v57 = vld [vmem:[%s1241_s21] sm:$0xff]  ;;  %v553_v58 = vld [vmem:[%s1241_s21 + $0x8] sm:$0xff]  ;;  %v555_v59 = vld [vmem:[%s1241_s21 + $0x10] sm:$0xff]  ;;  %s679_s24 = sadd.s32 1, %s1245_s22  ;;  %s545_s23 = sadd.s32 1, %s1249_s23   ;;  %s1249_s23 = sphi %s1571_s23, %s545_s23   ;;  %s1245_s22 = sphi %s1569_s22, %s1783_s22   ;;  %s1241_s21 = sphi %s1780_s21, %s1782_s21   ;;  %s1237_s20 = sphi %s1779_s20, %s1781_s20  }
  0x9b   : >> { %552 = vst [vmem:[%s1237_s20] sm:$0xff] %v551_v57  ;;  %554 = vst [vmem:[%s1237_s20 + $0x8] sm:$0xff] %v553_v58  ;;  %v557_v60 = vld [vmem:[%s1241_s21 + $0x18] sm:$0xff]  ;;  %v559_v61 = vld [vmem:[%s1241_s21 + $0x20] sm:$0xff]  ;;  %p680_p11 = scmp.ge.s32.totalorder %s679_s24, %s1560_s19  ;;  %p544_p12 = scmp.ge.s32.totalorder %s545_s23, %s1560_s19 }
  0x9c   : >> { %556 = vst [vmem:[%s1237_s20 + $0x10] sm:$0xff] %v555_v59  ;;  %v561_v62 = vld [vmem:[%s1241_s21 + $0x28] sm:$0xff]  ;;  %558 = vst [vmem:[%s1237_s20 + $0x18] sm:$0xff] %v557_v60  ;;  %v563_v63 = vld [vmem:[%s1241_s21 + $0x30] sm:$0xff] }
  0x9d   : >> { %560 = vst [vmem:[%s1237_s20 + $0x20] sm:$0xff] %v559_v61  ;;  %562 = vst [vmem:[%s1237_s20 + $0x28] sm:$0xff] %v561_v62  ;;  %v565_v0 = vld [vmem:[%s1241_s21 + $0x38] sm:$0xff]  ;;  %v567_v1 = vld [vmem:[%s1241_s21 + $0x40] sm:$0xff]  ;;  %s1799_s24 = smov (%p680_p11, %s679_s24), 0 }
  0x9e   : >> { %564 = vst [vmem:[%s1237_s20 + $0x30] sm:$0xff] %v563_v63  ;;  %566 = vst [vmem:[%s1237_s20 + $0x38] sm:$0xff] %v565_v0  ;;  %v569_v2 = vld [vmem:[%s1241_s21 + $0x48] sm:$0xff]  ;;  %v571_v3 = vld [vmem:[%s1241_s21 + $0x50] sm:$0xff]  ;;  %s907_s25 = sshll.u32 %s1799_s24, 9  ;;  %s1783_s22 = smov %s1799_s24 }
  0x9f   : >> { %568 = vst [vmem:[%s1237_s20 + $0x40] sm:$0xff] %v567_v1  ;;  %v573_v4 = vld [vmem:[%s1241_s21 + $0x58] sm:$0xff]  ;;  %570 = vst [vmem:[%s1237_s20 + $0x48] sm:$0xff] %v569_v2  ;;  %v575_v5 = vld [vmem:[%s1241_s21 + $0x60] sm:$0xff]  ;;  %s1627_s26 = scalar_lea.vmem %s1327_s27, %s907_s25 [#allocation2]   ;;  %s1630_s28 = scalar_lea.vmem %s1350_s5, %s907_s25  }
  0xa0   : >> { %572 = vst [vmem:[%s1237_s20 + $0x50] sm:$0xff] %v571_v3  ;;  %574 = vst [vmem:[%s1237_s20 + $0x58] sm:$0xff] %v573_v4  ;;  %v577_v6 = vld [vmem:[%s1241_s21 + $0x68] sm:$0xff]  ;;  %v579_v7 = vld [vmem:[%s1241_s21 + $0x70] sm:$0xff] }
  0xa1   : >> { %576 = vst [vmem:[%s1237_s20 + $0x60] sm:$0xff] %v575_v5  ;;  %578 = vst [vmem:[%s1237_s20 + $0x68] sm:$0xff] %v577_v6  ;;  %v581_v8 = vld [vmem:[%s1241_s21 + $0x78] sm:$0xff]  ;;  %v583_v9 = vld [vmem:[%s1241_s21 + $0x80] sm:$0xff] }
  0xa2   : >> { %580 = vst [vmem:[%s1237_s20 + $0x70] sm:$0xff] %v579_v7  ;;  %v585_v10 = vld [vmem:[%s1241_s21 + $0x88] sm:$0xff]  ;;  %582 = vst [vmem:[%s1237_s20 + $0x78] sm:$0xff] %v581_v8  ;;  %v587_v11 = vld [vmem:[%s1241_s21 + $0x90] sm:$0xff] }
  0xa3   : >> { %584 = vst [vmem:[%s1237_s20 + $0x80] sm:$0xff] %v583_v9  ;;  %586 = vst [vmem:[%s1237_s20 + $0x88] sm:$0xff] %v585_v10  ;;  %v589_v12 = vld [vmem:[%s1241_s21 + $0x98] sm:$0xff]  ;;  %v591_v13 = vld [vmem:[%s1241_s21 + $0xa0] sm:$0xff] }
  0xa4   : >> { %588 = vst [vmem:[%s1237_s20 + $0x90] sm:$0xff] %v587_v11  ;;  %590 = vst [vmem:[%s1237_s20 + $0x98] sm:$0xff] %v589_v12  ;;  %v593_v14 = vld [vmem:[%s1241_s21 + $0xa8] sm:$0xff]  ;;  %v595_v15 = vld [vmem:[%s1241_s21 + $0xb0] sm:$0xff] }
  0xa5   : >> { %592 = vst [vmem:[%s1237_s20 + $0xa0] sm:$0xff] %v591_v13  ;;  %v597_v16 = vld [vmem:[%s1241_s21 + $0xb8] sm:$0xff]  ;;  %594 = vst [vmem:[%s1237_s20 + $0xa8] sm:$0xff] %v593_v14  ;;  %v599_v17 = vld [vmem:[%s1241_s21 + $0xc0] sm:$0xff] }
  0xa6   : >> { %596 = vst [vmem:[%s1237_s20 + $0xb0] sm:$0xff] %v595_v15  ;;  %598 = vst [vmem:[%s1237_s20 + $0xb8] sm:$0xff] %v597_v16  ;;  %v601_v18 = vld [vmem:[%s1241_s21 + $0xc8] sm:$0xff]  ;;  %v603_v19 = vld [vmem:[%s1241_s21 + $0xd0] sm:$0xff] }
  0xa7   : >> { %600 = vst [vmem:[%s1237_s20 + $0xc0] sm:$0xff] %v599_v17  ;;  %602 = vst [vmem:[%s1237_s20 + $0xc8] sm:$0xff] %v601_v18  ;;  %v605_v20 = vld [vmem:[%s1241_s21 + $0xd8] sm:$0xff]  ;;  %v607_v21 = vld [vmem:[%s1241_s21 + $0xe0] sm:$0xff] }
  0xa8   : >> { %604 = vst [vmem:[%s1237_s20 + $0xd0] sm:$0xff] %v603_v19  ;;  %v609_v22 = vld [vmem:[%s1241_s21 + $0xe8] sm:$0xff]  ;;  %606 = vst [vmem:[%s1237_s20 + $0xd8] sm:$0xff] %v605_v20  ;;  %v611_v23 = vld [vmem:[%s1241_s21 + $0xf0] sm:$0xff] }
  0xa9   : >> { %608 = vst [vmem:[%s1237_s20 + $0xe0] sm:$0xff] %v607_v21  ;;  %610 = vst [vmem:[%s1237_s20 + $0xe8] sm:$0xff] %v609_v22  ;;  %v613_v24 = vld [vmem:[%s1241_s21 + $0xf8] sm:$0xff]  ;;  %v615_v25 = vld [vmem:[%s1241_s21 + $0x100] sm:$0xff] }
  0xaa   : >> { %612 = vst [vmem:[%s1237_s20 + $0xf0] sm:$0xff] %v611_v23  ;;  %614 = vst [vmem:[%s1237_s20 + $0xf8] sm:$0xff] %v613_v24  ;;  %v617_v26 = vld [vmem:[%s1241_s21 + $0x108] sm:$0xff]  ;;  %v619_v27 = vld [vmem:[%s1241_s21 + $0x110] sm:$0xff] }
  0xab   : >> { %616 = vst [vmem:[%s1237_s20 + $0x100] sm:$0xff] %v615_v25  ;;  %v621_v28 = vld [vmem:[%s1241_s21 + $0x118] sm:$0xff]  ;;  %618 = vst [vmem:[%s1237_s20 + $0x108] sm:$0xff] %v617_v26  ;;  %v623_v29 = vld [vmem:[%s1241_s21 + $0x120] sm:$0xff] }
  0xac   : >> { %620 = vst [vmem:[%s1237_s20 + $0x110] sm:$0xff] %v619_v27  ;;  %622 = vst [vmem:[%s1237_s20 + $0x118] sm:$0xff] %v621_v28  ;;  %v625_v30 = vld [vmem:[%s1241_s21 + $0x128] sm:$0xff]  ;;  %v627_v31 = vld [vmem:[%s1241_s21 + $0x130] sm:$0xff] }
  0xad   : >> { %624 = vst [vmem:[%s1237_s20 + $0x120] sm:$0xff] %v623_v29  ;;  %626 = vst [vmem:[%s1237_s20 + $0x128] sm:$0xff] %v625_v30  ;;  %v629_v32 = vld [vmem:[%s1241_s21 + $0x138] sm:$0xff]  ;;  %v631_v33 = vld [vmem:[%s1241_s21 + $0x140] sm:$0xff] }
  0xae   : >> { %628 = vst [vmem:[%s1237_s20 + $0x130] sm:$0xff] %v627_v31  ;;  %v633_v34 = vld [vmem:[%s1241_s21 + $0x148] sm:$0xff]  ;;  %630 = vst [vmem:[%s1237_s20 + $0x138] sm:$0xff] %v629_v32  ;;  %v635_v35 = vld [vmem:[%s1241_s21 + $0x150] sm:$0xff] }
  0xaf   : >> { %632 = vst [vmem:[%s1237_s20 + $0x140] sm:$0xff] %v631_v33  ;;  %634 = vst [vmem:[%s1237_s20 + $0x148] sm:$0xff] %v633_v34  ;;  %v637_v36 = vld [vmem:[%s1241_s21 + $0x158] sm:$0xff]  ;;  %v639_v37 = vld [vmem:[%s1241_s21 + $0x160] sm:$0xff] }
  0xb0   : >> { %636 = vst [vmem:[%s1237_s20 + $0x150] sm:$0xff] %v635_v35  ;;  %638 = vst [vmem:[%s1237_s20 + $0x158] sm:$0xff] %v637_v36  ;;  %v641_v38 = vld [vmem:[%s1241_s21 + $0x168] sm:$0xff]  ;;  %v643_v39 = vld [vmem:[%s1241_s21 + $0x170] sm:$0xff] }
  0xb1   : >> { %640 = vst [vmem:[%s1237_s20 + $0x160] sm:$0xff] %v639_v37  ;;  %v645_v40 = vld [vmem:[%s1241_s21 + $0x178] sm:$0xff]  ;;  %642 = vst [vmem:[%s1237_s20 + $0x168] sm:$0xff] %v641_v38  ;;  %v647_v41 = vld [vmem:[%s1241_s21 + $0x180] sm:$0xff] }
  0xb2   : >> { %644 = vst [vmem:[%s1237_s20 + $0x170] sm:$0xff] %v643_v39  ;;  %646 = vst [vmem:[%s1237_s20 + $0x178] sm:$0xff] %v645_v40  ;;  %v649_v42 = vld [vmem:[%s1241_s21 + $0x188] sm:$0xff]  ;;  %v651_v43 = vld [vmem:[%s1241_s21 + $0x190] sm:$0xff] }
  0xb3   : >> { %648 = vst [vmem:[%s1237_s20 + $0x180] sm:$0xff] %v647_v41  ;;  %650 = vst [vmem:[%s1237_s20 + $0x188] sm:$0xff] %v649_v42  ;;  %v653_v44 = vld [vmem:[%s1241_s21 + $0x198] sm:$0xff]  ;;  %v655_v45 = vld [vmem:[%s1241_s21 + $0x1a0] sm:$0xff] }
  0xb4   : >> { %652 = vst [vmem:[%s1237_s20 + $0x190] sm:$0xff] %v651_v43  ;;  %v657_v46 = vld [vmem:[%s1241_s21 + $0x1a8] sm:$0xff]  ;;  %654 = vst [vmem:[%s1237_s20 + $0x198] sm:$0xff] %v653_v44  ;;  %v659_v47 = vld [vmem:[%s1241_s21 + $0x1b0] sm:$0xff] }
  0xb5   : >> { %656 = vst [vmem:[%s1237_s20 + $0x1a0] sm:$0xff] %v655_v45  ;;  %658 = vst [vmem:[%s1237_s20 + $0x1a8] sm:$0xff] %v657_v46  ;;  %v661_v48 = vld [vmem:[%s1241_s21 + $0x1b8] sm:$0xff]  ;;  %v663_v49 = vld [vmem:[%s1241_s21 + $0x1c0] sm:$0xff] }
  0xb6   : >> { %660 = vst [vmem:[%s1237_s20 + $0x1b0] sm:$0xff] %v659_v47  ;;  %662 = vst [vmem:[%s1237_s20 + $0x1b8] sm:$0xff] %v661_v48  ;;  %v665_v50 = vld [vmem:[%s1241_s21 + $0x1c8] sm:$0xff]  ;;  %v667_v51 = vld [vmem:[%s1241_s21 + $0x1d0] sm:$0xff]  ;;  %547 = sbr.rel (!%p544_p12) target bundleno = 154 (0x9a), region = 172 }
  0xb7   : >> { %664 = vst [vmem:[%s1237_s20 + $0x1c0] sm:$0xff] %v663_v49  ;;  %v669_v52 = vld [vmem:[%s1241_s21 + $0x1d8] sm:$0xff]  ;;  %666 = vst [vmem:[%s1237_s20 + $0x1c8] sm:$0xff] %v665_v50  ;;  %v671_v53 = vld [vmem:[%s1241_s21 + $0x1e0] sm:$0xff] }
  0xb8   : >> { %668 = vst [vmem:[%s1237_s20 + $0x1d0] sm:$0xff] %v667_v51  ;;  %670 = vst [vmem:[%s1237_s20 + $0x1d8] sm:$0xff] %v669_v52  ;;  %v673_v54 = vld [vmem:[%s1241_s21 + $0x1e8] sm:$0xff]  ;;  %v675_v55 = vld [vmem:[%s1241_s21 + $0x1f0] sm:$0xff] }
  0xb9   : >> { %672 = vst [vmem:[%s1237_s20 + $0x1e0] sm:$0xff] %v671_v53  ;;  %674 = vst [vmem:[%s1237_s20 + $0x1e8] sm:$0xff] %v673_v54  ;;  %v677_v56 = vld [vmem:[%s1241_s21 + $0x1f8] sm:$0xff]  ;;  %s1782_s21 = smov %s1627_s26 }
  0xba   : >> { %676 = vst [vmem:[%s1237_s20 + $0x1f0] sm:$0xff] %v675_v55  ;;  %678 = vst [vmem:[%s1237_s20 + $0x1f8] sm:$0xff] %v677_v56  ;;  %s1781_s20 = smov %s1630_s28 }
  0xbb PF: > { %s1736_s29 = sand.u32 63, %s538_s15   ;;  %s923_s30 = sshll.u32 %s1560_s19, 13 }
  0xbc   : > { %s690_s2 = sshra.s32 %s923_s30, 4  ;;  %p912_p13 = scmp.le.s32.totalorder %s1736_s29, 0 }
  0xbd   : > { %s691_s3 = scalar_lea.vmem %s1327_s27, %s690_s2 [#allocation2]   ;;  %s694_s4 = scalar_lea.vmem %s1350_s5, %s690_s2  }
  0xbe   : > { %840 = sbr.rel (%p912_p13) target bundleno = 203 (0xcb), region = 177  ;;  %s1251_s6 = smov (!%p912_p13), %s694_s4  }
  0xbf   : > { %s1255_s8 = smov (!%p912_p13), %s691_s3   ;;  %s1259_s24 = smov (!%p912_p13), 0  }
  0xc0   : > { %s1263_s23 = smov (!%p912_p13), 0  }
  0xc3 LB: >> { %v706_v57 = vld [vmem:[%s1257_s8] sm:$0xff]  ;;  %s708_s15 = sadd.s32 1, %s1261_s24  ;;  %s700_s23 = sadd.s32 1, %s1265_s23   ;;  %s1265_s23 = sphi %s1263_s23, %s700_s23   ;;  %s1261_s24 = sphi %s1259_s24, %s1260_s24   ;;  %s1257_s8 = sphi %s1255_s8, %s713_s8   ;;  %s1253_s6 = sphi %s1251_s6, %s714_s6  }
  0xc4   : >> { %707 = vst [vmem:[%s1253_s6] sm:$0xff] %v706_v57  ;;  %p709_p0 = scmp.ge.s32.totalorder %s708_s15, %s1736_s29  ;;  %p699_p1 = scmp.ge.s32.totalorder %s700_s23, %s1736_s29 }
  0xc6   : >> { %s1801_s15 = smov (%p709_p0, %s708_s15), 0  ;;  %702 = sbr.rel (!%p699_p1) target bundleno = 195 (0xc3), region = 183 }
  0xc7   : >> { %s913_s19 = sshll.u32 %s1801_s15, 3  ;;  %s1260_s24 = smov %s1801_s15  }
  0xc8   : >> { %s713_s8 = scalar_lea.vmem %s691_s3, %s913_s19 [#allocation2]   ;;  %s714_s6 = scalar_lea.vmem %s694_s4, %s913_s19  }
  0xcb PF: > { %s1269_s20 = smov 1  }
  0xcc   : > { %s715_s21 = sshll.u32 %s1269_s20, %s1356_s13 }
  0xcd   : > { %s915_s22 = sadd.s32 4294967295, %s715_s21 }
  0xce   : > { %v725_v58 = vld [vmem:[%s535_s17] sm:%s915_s22] }
  0xcf   : > { %726 = vst [vmem:[%s537_s18] sm:%s915_s22] %v725_v58 }
  0xd0 PF: > { %p916_p2 = scmp.ge.u32.totalorder %s1352_s11, 8 }
  0xd1   : > { %s1270_s25 = smov (!%p916_p2), 1  }
  0xd2   : > { %335 = sbr.rel (%p916_p2) target bundleno = 217 (0xd9), region = 52  ;;  %s336_s26 = sshll.u32 (!%p916_p2), %s1270_s25, %s1352_s11 }
  0xd3   : > { %s917_s28 = sadd.s32 (!%p916_p2), 4294967295, %s336_s26 }
  0xd7   : > { %v346_v59 = vld [vmem:[%s1327_s27] sm:%s917_s28] }
  0xd8   : > { %347 = vst [vmem:[%s1350_s5] sm:%s917_s28] %v346_v59 }
  0xd9 PF: > { %s11_s10 = sadd.s32 1, %s1201_s10   ;;  %s1784_s6 = smov %s1189_s7 }
  0xda   : > { %p8_p3 = scmp.ge.s32.totalorder %s11_s10, 4   ;;  %s1785_s7 = smov %s1319_s16 }
  0xdb   : > { %s1786_s8 = smov %s1197_s9  ;;  %s1787_s9 = smov %s1789_s12 }
  0xdc   :  { %10 = sbr.rel (!%p8_p3) target bundleno = 3 (0x3), region = 194 }

</bundles_post_ra>
